<compile_context>
chip_gen: v7x
topology: tpu7x:2x2x1
jax: 0.10.0
libtpu: 0.0.40
codegen_flags: <defaults>
</compile_context>

<pallas_src>
import functools

import jax
import jax.numpy as jnp
from jax import lax
from jax.experimental import pallas as pl
from jax.experimental.pallas import tpu as pltpu


def _infonce_kernel(q_ref, p_ref,
                    row_out_ref, colm_out_ref, coll_out_ref,
                    rowm_ref, rowl_ref, diag_ref, qs_ref,
                    *, inv_temp):
    """One (q-tile, p-tile) grid step of the in-batch InfoNCE loss."""
    qi = pl.program_id(0)
    pj = pl.program_id(1)
    n_p = pl.num_programs(1)
    eps = 1e-8

    # ---- once per q tile: normalize the resident q tile (1/T folded into the
    #      scale), cache it in the MXU dtype, and reset the row-LSE stats.
    #      Scale in f32, cast once -> no double rounding of rsqrt * 1/T.
    @pl.when(pj == 0)
    def _():
        qf = q_ref[...].astype(jnp.float32)
        q_scale = lax.rsqrt(
            jnp.maximum(jnp.sum(qf * qf, axis=-1, keepdims=True), eps * eps)
        ) * inv_temp
        qs_ref[...] = (qf * q_scale).astype(qs_ref.dtype)
        rowm_ref[...] = jnp.full_like(rowm_ref, -jnp.inf)
        rowl_ref[...] = jnp.zeros_like(rowl_ref)

    # ---- p-tile normalization (per step).  NOTE: caching p norms across q
    #      tiles (review item) would need a scratch filled under qi == 0,
    #      which breaks once the q axis is megacore-"parallel" (a core may
    #      never run qi == 0); we keep the per-step recompute so v7x can
    #      split the q axis across its two TensorCores.
    pf = p_ref[...].astype(jnp.float32)
    p_scale = lax.rsqrt(
        jnp.maximum(jnp.sum(pf * pf, axis=-1, keepdims=True), eps * eps))
    ps = (pf * p_scale).astype(qs_ref.dtype)

    # ---- logits block (tq, tp): MXU matmul with f32 accumulation.
    s = lax.dot_general(qs_ref[...], ps, (((1,), (1,)), ((), ())),
                        preferred_element_type=jnp.float32)

    # ---- online row logsumexp (CE(scores_qp)), streamed over the p axis.
    rm_old = rowm_ref[...]
    rm_new = jnp.maximum(rm_old, jnp.max(s, axis=1, keepdims=True))     # (tq,1)
    rowl_ref[...] = (rowl_ref[...] * jnp.exp(rm_old - rm_new)
                     + jnp.sum(jnp.exp(s - rm_new), axis=1, keepdims=True))
    rowm_ref[...] = rm_new

    # ---- per-(q-tile, p-block) column stats -> lane-dense outputs; merged in
    #      a tiny JAX epilogue (keeps the q axis free of cross-tile state).
    cm = jnp.max(s, axis=0, keepdims=True)                              # (1,tp)
    cl = jnp.sum(jnp.exp(s - cm), axis=0, keepdims=True)
    colm_out_ref[...] = cm.reshape(colm_out_ref.shape)
    coll_out_ref[...] = cl.reshape(coll_out_ref.shape)

    # ---- diagonal (target) logits live in the pj == qi block; reuse the MXU
    #      output with an iota mask instead of a fresh O(tile*D) dot.
    @pl.when(pj == qi)
    def _():
        tq, tp = s.shape
        ri = lax.broadcasted_iota(jnp.int32, (tq, tp), 0)
        ci = lax.broadcasted_iota(jnp.int32, (tq, tp), 1)
        diag_ref[...] = jnp.sum(jnp.where(ri == ci, s, 0.0),
                                axis=1, keepdims=True)

    # ---- per-row contribution completes after the last p block; write the
    #      (resident) output block exactly once.
    @pl.when(pj == n_p - 1)
    def _():
        row_out_ref[...] = (rowm_ref[...] + jnp.log(rowl_ref[...])
                            - 2.0 * diag_ref[...])


def _vmem_budget_bytes():
    """~75% of physical per-core VMEM (v5e/v6e: 128 MiB, v7x: 64 MiB)."""
    try:
        cap = int(pltpu.get_tpu_info().vmem_capacity_bytes)
    except Exception:
        cap = 64 * 1024 * 1024       # conservative fallback: v7x per-TensorCore
    return (cap * 3) // 4


def _est_vmem_bytes(block_rows, dim, in_itemsize, mxu_itemsize):
    """Generous per-step VMEM working-set estimate for one (q,p) tile pair."""
    t, d = block_rows, dim
    return int(
        2 * t * d * in_itemsize       # q tile (pipeline double buffer)
        + 2 * t * d * in_itemsize     # p tile (pipeline double buffer)
        + t * d * mxu_itemsize        # normalized q scratch
        + 3 * t * d * 4               # f32 normalization temporaries
        + 4 * t * t * 4               # logits block + exp / mask temporaries
        + 64 * t)                     # row stats, diag, row/col output blocks


def _pick_block_rows(batch, dim, in_itemsize, mxu_itemsize, budget):
    """Largest tile that divides batch, keeps the column outputs 128-lane
    aligned (block_rows % 128 == 0, or a single full-batch tile), and fits the
    VMEM budget.  Bigger tiles cut the re-streamed p HBM traffic (the dominant
    cost) and the number of per-step overheads."""
    cands = [m for m in range(1024, 0, -128) if m < batch and batch % m == 0]
    if batch <= 1024 or not cands:
        cands = [batch] + cands       # single full tile for small/irregular batch
    for c in cands:
        if _est_vmem_bytes(c, dim, in_itemsize, mxu_itemsize) <= budget:
            return c
    # TODO(synk): pad/mask ragged or oversized batches instead of giving up.
    raise ValueError(f"no block size for batch={batch}, hidden={dim} fits the "
                     f"VMEM budget ({budget} bytes)")


def in_batch_negative_infonce_loss(q_emb, p_emb, n_emb=None, temperature=1.0,
                                   block_rows=None, matmul_dtype=None):
    # TODO(synk): the optional hard-negative (n_emb) branch of the PyTorch
    # module is not implemented in-kernel.
    if n_emb is not None:
        raise NotImplementedError("n_emb path not implemented in Pallas kernel")
    assert q_emb.shape == p_emb.shape and q_emb.ndim == 2
    batch, dim = q_emb.shape

    # MXU operand dtype: defaults to the input dtype.  Callers whose training
    # tolerates it should pass bf16 embeddings (halves streamed HBM bytes) or
    # set matmul_dtype=jnp.bfloat16; accumulation / softmax math stays f32.
    mxu_dtype = jnp.dtype(matmul_dtype) if matmul_dtype is not None \
        else jnp.dtype(q_emb.dtype)
    in_itemsize = jnp.dtype(q_emb.dtype).itemsize
    mxu_itemsize = mxu_dtype.itemsize

    budget = _vmem_budget_bytes()
    if block_rows is None:
        block_rows = _pick_block_rows(batch, dim, in_itemsize, mxu_itemsize,
                                      budget)
    assert batch % block_rows == 0
    assert block_rows == batch or block_rows % 128 == 0, (
        "block_rows must be a multiple of 128 or cover the full batch")
    grid_b = batch // block_rows

    est_vmem = _est_vmem_bytes(block_rows, dim, in_itemsize, mxu_itemsize)

    kernel = functools.partial(_infonce_kernel,
                               inv_temp=1.0 / float(temperature))

    cp_kwargs = dict(
        # No state is carried across q tiles (per-q-tile partials are merged in
        # the JAX epilogue below), so the q axis is megacore-parallel (~2x on
        # v7x's two TensorCores).  The p axis carries the online row-LSE state.
        dimension_semantics=("parallel", "arbitrary"),
    )
    if est_vmem > 12 * 1024 * 1024:
        # Raise the scoped VMEM limit, but never above ~75% of physical VMEM
        # (v7x only has 64 MiB per TensorCore).
        cp_kwargs["vmem_limit_bytes"] = int(
            min(budget, max(2 * est_vmem, 32 * 1024 * 1024)))

    row_out, colm, coll = pl.pallas_call(
        kernel,
        out_shape=(
            # per-row rowLSE - 2 * diag
            jax.ShapeDtypeStruct((batch, 1), jnp.float32),
            # per-(q-tile, column) partial max / sum-exp (lane-dense)
            jax.ShapeDtypeStruct((grid_b, 1, batch), jnp.float32),
            jax.ShapeDtypeStruct((grid_b, 1, batch), jnp.float32),
        ),
        grid_spec=pltpu.PrefetchScalarGridSpec(
            num_scalar_prefetch=0,
            grid=(grid_b, grid_b),
            in_specs=[
                # q tile: resident across the whole inner (p) axis.
                pl.BlockSpec((block_rows, dim), lambda i, j: (i, 0)),
                # p tile: streamed along the inner axis (double-buffered DMA).
                # (If profiling shows exposed DMA at small dim/batch, add
                #  pipeline_mode=pl.Buffered(3) here.)
                pl.BlockSpec((block_rows, dim), lambda i, j: (j, 0)),
            ],
            out_specs=[
                pl.BlockSpec((block_rows, 1), lambda i, j: (i, 0)),
                pl.BlockSpec((1, 1, block_rows), lambda i, j: (i, 0, j)),
                pl.BlockSpec((1, 1, block_rows), lambda i, j: (i, 0, j)),
            ],
            scratch_shapes=[
                pltpu.VMEM((block_rows, 1), jnp.float32),   # row running max
                pltpu.VMEM((block_rows, 1), jnp.float32),   # row running sumexp
                pltpu.VMEM((block_rows, 1), jnp.float32),   # diagonal logits
                pltpu.VMEM((block_rows, dim), mxu_dtype),   # normalized q tile
            ],
        ),
        compiler_params=pltpu.CompilerParams(**cp_kwargs),
    )(q_emb, p_emb)

    # Tiny JAX epilogue: merge per-q-tile column LSE partials and reduce.
    m = jnp.max(colm, axis=0)                                 # (1, batch)
    l = jnp.sum(coll * jnp.exp(colm - m), axis=0)             # (1, batch)
    col_total = jnp.sum(m + jnp.log(l))
    return (jnp.sum(row_out) + col_total) / batch


def _reference_loss(q, p, temperature=1.0):
    """Pure-JAX mirror of the PyTorch module (n_emb=None path)."""
    q = q.astype(jnp.float32)
    p = p.astype(jnp.float32)
    eps = 1e-8
    qn = jnp.maximum(jnp.linalg.norm(q, axis=-1, keepdims=True), eps)
    pn = jnp.maximum(jnp.linalg.norm(p, axis=-1, keepdims=True), eps)
    scores = ((q / qn) @ (p / pn).T) / temperature
    labels = jnp.arange(q.shape[0])

    def ce(s):
        logp = jax.nn.log_softmax(s, axis=-1)
        return -jnp.mean(logp[jnp.arange(s.shape[0]), labels])

    return ce(scores) + ce(scores.T)


if __name__ == "__main__":
    key = jax.random.PRNGKey(0)
    kq, kp = jax.random.split(key)

    # Small shapes consistent with the module: a batch of embedding pairs.
    B, D = 8, 32
    q_emb = jax.random.normal(kq, (B, D), dtype=jnp.float32)
    p_emb = jax.random.normal(kp, (B, D), dtype=jnp.float32)

    loss = jax.block_until_ready(
        in_batch_negative_infonce_loss(q_emb, p_emb, temperature=1.0))
    ref = _reference_loss(q_emb, p_emb, temperature=1.0)
    assert jnp.allclose(loss, ref, rtol=1e-5, atol=1e-5), (loss, ref)

    # Multi-tile path (2x2 grid): exercises the online row logsumexp, the
    # per-q-tile column partials + epilogue merge, the diagonal block and the
    # hoisted q-normalization scratch.
    B2, D2 = 256, 128
    q2 = jax.random.normal(jax.random.PRNGKey(1), (B2, D2), dtype=jnp.float32)
    p2 = jax.random.normal(jax.random.PRNGKey(2), (B2, D2), dtype=jnp.float32)
    loss2 = jax.block_until_ready(
        in_batch_negative_infonce_loss(q2, p2, temperature=0.1,
                                       block_rows=128))
    ref2 = _reference_loss(q2, p2, temperature=0.1)
    assert jnp.allclose(loss2, ref2, rtol=1e-4, atol=1e-4), (loss2, ref2)

    print("KERNEL_OK")
</pallas_src>

<mosaic_0001>
module attributes {stable_mosaic.version = 11 : i64} {
  func.func @_infonce_kernel(%arg0: i32, %arg1: i32, %arg2: memref<8x32xf32, #tpu.memory_space<vmem>>, %arg3: memref<8x32xf32, #tpu.memory_space<vmem>>, %arg4: memref<8x1xf32, #tpu.memory_space<vmem>>, %arg5: memref<1x1x8xf32, #tpu.memory_space<vmem>>, %arg6: memref<1x1x8xf32, #tpu.memory_space<vmem>>, %arg7: memref<8x1xf32, #tpu.memory_space<vmem>>, %arg8: memref<8x1xf32, #tpu.memory_space<vmem>>, %arg9: memref<8x1xf32, #tpu.memory_space<vmem>>, %arg10: memref<8x32xf32, #tpu.memory_space<vmem>>) attributes {dimension_semantics = [#tpu.dimension_semantics<parallel>, #tpu.dimension_semantics<arbitrary>], iteration_bounds = array<i64: 1, 1>, scalar_prefetch = 0 : i64, scratch_operands = 4 : i64, tpu.core_type = #tpu.core_type<tc>, window_params = [{transform_indices = @transform_0, window_bounds = array<i64: 8, 32>}, {transform_indices = @transform_1, window_bounds = array<i64: 8, 32>}, {transform_indices = @transform_2, window_bounds = array<i64: 8, 1>}, {transform_indices = @transform_3, window_bounds = array<i64: 1, 1, 8>}, {transform_indices = @transform_4, window_bounds = array<i64: 1, 1, 8>}]} {
    %c0_i32 = arith.constant 0 : i32
    %0 = arith.cmpi eq, %arg1, %c0_i32 : i32
    %1 = arith.extui %0 : i1 to i32
    %c0_i32_0 = arith.constant 0 : i32
    %2 = arith.cmpi ne, %1, %c0_i32_0 : i32
    scf.if %2 {
      %c0_27 = arith.constant 0 : index
      %c0_28 = arith.constant 0 : index
      %47 = vector.load %arg2[%c0_27, %c0_28] : memref<8x32xf32, #tpu.memory_space<vmem>>, vector<8x32xf32>
      %48 = arith.mulf %47, %47 : vector<8x32xf32>
      %cst_29 = arith.constant dense<0.000000e+00> : vector<8xf32>
      %49 = vector.multi_reduction <add>, %48, %cst_29 [1] : vector<8x32xf32> to vector<8xf32>
      %50 = vector.shape_cast %49 : vector<8xf32> to vector<8x1xf32>
      %cst_30 = arith.constant 1.000000e-16 : f32
      %51 = vector.broadcast %cst_30 : f32 to vector<8x1xf32>
      %52 = arith.maximumf %50, %51 : vector<8x1xf32>
      %53 = math.rsqrt %52 : vector<8x1xf32>
      %cst_31 = arith.constant 1.000000e+00 : f32
      %54 = vector.broadcast %cst_31 : f32 to vector<8x1xf32>
      %55 = arith.mulf %53, %54 : vector<8x1xf32>
      %56 = vector.broadcast %55 : vector<8x1xf32> to vector<8x32xf32>
      %57 = arith.mulf %47, %56 : vector<8x32xf32>
      %c0_32 = arith.constant 0 : index
      %c0_33 = arith.constant 0 : index
      %58 = vector.load %arg10[%c0_32, %c0_33] : memref<8x32xf32, #tpu.memory_space<vmem>>, vector<8x32xf32>
      tpu.vector_store %arg10[%c0_32, %c0_33], %57 {strides = array<i32>} : memref<8x32xf32, #tpu.memory_space<vmem>>, vector<8x32xf32>,
      %cst_34 = arith.constant 0xFF800000 : f32
      %59 = vector.broadcast %cst_34 : f32 to vector<8x1xf32>
      %c0_35 = arith.constant 0 : index
      %c0_36 = arith.constant 0 : index
      %60 = vector.load %arg7[%c0_35, %c0_36] : memref<8x1xf32, #tpu.memory_space<vmem>>, vector<8x1xf32>
      tpu.vector_store %arg7[%c0_35, %c0_36], %59 {strides = array<i32>} : memref<8x1xf32, #tpu.memory_space<vmem>>, vector<8x1xf32>,
      %cst_37 = arith.constant 0.000000e+00 : f32
      %61 = vector.broadcast %cst_37 : f32 to vector<8x1xf32>
      %c0_38 = arith.constant 0 : index
      %c0_39 = arith.constant 0 : index
      %62 = vector.load %arg8[%c0_38, %c0_39] : memref<8x1xf32, #tpu.memory_space<vmem>>, vector<8x1xf32>
      tpu.vector_store %arg8[%c0_38, %c0_39], %61 {strides = array<i32>} : memref<8x1xf32, #tpu.memory_space<vmem>>, vector<8x1xf32>,
    } else {
    }
    %c0 = arith.constant 0 : index
    %c0_1 = arith.constant 0 : index
    %3 = vector.load %arg3[%c0, %c0_1] : memref<8x32xf32, #tpu.memory_space<vmem>>, vector<8x32xf32>
    %4 = arith.mulf %3, %3 : vector<8x32xf32>
    %cst = arith.constant dense<0.000000e+00> : vector<8xf32>
    %5 = vector.multi_reduction <add>, %4, %cst [1] : vector<8x32xf32> to vector<8xf32>
    %6 = vector.shape_cast %5 : vector<8xf32> to vector<8x1xf32>
    %cst_2 = arith.constant 1.000000e-16 : f32
    %7 = vector.broadcast %cst_2 : f32 to vector<8x1xf32>
    %8 = arith.maximumf %6, %7 : vector<8x1xf32>
    %9 = math.rsqrt %8 : vector<8x1xf32>
    %10 = vector.broadcast %9 : vector<8x1xf32> to vector<8x32xf32>
    %11 = arith.mulf %3, %10 : vector<8x32xf32>
    %c0_3 = arith.constant 0 : index
    %c0_4 = arith.constant 0 : index
    %12 = vector.load %arg10[%c0_3, %c0_4] : memref<8x32xf32, #tpu.memory_space<vmem>>, vector<8x32xf32>
    %cst_5 = arith.constant dense<0.000000e+00> : vector<8x8xf32>
    %13 = tpu.matmul %12, %11, %cst_5 {dimension_numbers = #tpu.dot_dimension_numbers<[1], [1], [0], [0], [0, 0, 1, 0], [], []>} : vector<8x32xf32>, vector<8x32xf32>, vector<8x8xf32> -> vector<8x8xf32>
    %c0_6 = arith.constant 0 : index
    %c0_7 = arith.constant 0 : index
    %14 = vector.load %arg7[%c0_6, %c0_7] : memref<8x1xf32, #tpu.memory_space<vmem>>, vector<8x1xf32>
    %cst_8 = arith.constant dense<0xFF800000> : vector<8xf32>
    %15 = vector.multi_reduction <maximumf>, %13, %cst_8 [1] : vector<8x8xf32> to vector<8xf32>
    %16 = vector.shape_cast %15 : vector<8xf32> to vector<8x1xf32>
    %17 = arith.maximumf %14, %16 : vector<8x1xf32>
    %c0_9 = arith.constant 0 : index
    %c0_10 = arith.constant 0 : index
    %18 = vector.load %arg8[%c0_9, %c0_10] : memref<8x1xf32, #tpu.memory_space<vmem>>, vector<8x1xf32>
    %19 = arith.subf %14, %17 : vector<8x1xf32>
    %20 = math.exp %19 : vector<8x1xf32>
    %21 = arith.mulf %18, %20 : vector<8x1xf32>
    %22 = vector.broadcast %17 : vector<8x1xf32> to vector<8x8xf32>
    %23 = arith.subf %13, %22 : vector<8x8xf32>
    %24 = math.exp %23 : vector<8x8xf32>
    %cst_11 = arith.constant dense<0.000000e+00> : vector<8xf32>
    %25 = vector.multi_reduction <add>, %24, %cst_11 [1] : vector<8x8xf32> to vector<8xf32>
    %26 = vector.shape_cast %25 : vector<8xf32> to vector<8x1xf32>
    %27 = arith.addf %21, %26 : vector<8x1xf32>
    %c0_12 = arith.constant 0 : index
    %c0_13 = arith.constant 0 : index
    %28 = vector.load %arg8[%c0_12, %c0_13] : memref<8x1xf32, #tpu.memory_space<vmem>>, vector<8x1xf32>
    tpu.vector_store %arg8[%c0_12, %c0_13], %27 {strides = array<i32>} : memref<8x1xf32, #tpu.memory_space<vmem>>, vector<8x1xf32>,
    %c0_14 = arith.constant 0 : index
    %c0_15 = arith.constant 0 : index
    %29 = vector.load %arg7[%c0_14, %c0_15] : memref<8x1xf32, #tpu.memory_space<vmem>>, vector<8x1xf32>
    tpu.vector_store %arg7[%c0_14, %c0_15], %17 {strides = array<i32>} : memref<8x1xf32, #tpu.memory_space<vmem>>, vector<8x1xf32>,
    %cst_16 = arith.constant dense<0xFF800000> : vector<8xf32>
    %30 = vector.multi_reduction <maximumf>, %13, %cst_16 [0] : vector<8x8xf32> to vector<8xf32>
    %31 = vector.shape_cast %30 : vector<8xf32> to vector<1x8xf32>
    %32 = vector.broadcast %31 : vector<1x8xf32> to vector<8x8xf32>
    %33 = arith.subf %13, %32 : vector<8x8xf32>
    %34 = math.exp %33 : vector<8x8xf32>
    %cst_17 = arith.constant dense<0.000000e+00> : vector<8xf32>
    %35 = vector.multi_reduction <add>, %34, %cst_17 [0] : vector<8x8xf32> to vector<8xf32>
    %36 = vector.shape_cast %35 : vector<8xf32> to vector<1x8xf32>
    %37 = vector.shape_cast %31 : vector<1x8xf32> to vector<1x1x8xf32>
    %c0_18 = arith.constant 0 : index
    %c0_19 = arith.constant 0 : index
    %c0_20 = arith.constant 0 : index
    %38 = vector.load %arg5[%c0_18, %c0_19, %c0_20] : memref<1x1x8xf32, #tpu.memory_space<vmem>>, vector<1x1x8xf32>
    tpu.vector_store %arg5[%c0_18, %c0_19, %c0_20], %37 {strides = array<i32>} : memref<1x1x8xf32, #tpu.memory_space<vmem>>, vector<1x1x8xf32>,
    %39 = vector.shape_cast %36 : vector<1x8xf32> to vector<1x1x8xf32>
    %c0_21 = arith.constant 0 : index
    %c0_22 = arith.constant 0 : index
    %c0_23 = arith.constant 0 : index
    %40 = vector.load %arg6[%c0_21, %c0_22, %c0_23] : memref<1x1x8xf32, #tpu.memory_space<vmem>>, vector<1x1x8xf32>
    tpu.vector_store %arg6[%c0_21, %c0_22, %c0_23], %39 {strides = array<i32>} : memref<1x1x8xf32, #tpu.memory_space<vmem>>, vector<1x1x8xf32>,
    %41 = arith.cmpi eq, %arg1, %arg0 : i32
    %42 = arith.extui %41 : i1 to i32
    %c0_i32_24 = arith.constant 0 : i32
    %43 = arith.cmpi ne, %42, %c0_i32_24 : i32
    scf.if %43 {
      %47 = tpu.iota {dimensions = array<i32: 0>} : vector<8x8xi32>
      %48 = tpu.iota {dimensions = array<i32: 1>} : vector<8x8xi32>
      %49 = arith.cmpi eq, %47, %48 : vector<8x8xi32>
      %cst_27 = arith.constant 0.000000e+00 : f32
      %50 = vector.broadcast %cst_27 : f32 to vector<8x8xf32>
      %51 = arith.select %49, %13, %50 : vector<8x8xi1>, vector<8x8xf32>
      %cst_28 = arith.constant dense<0.000000e+00> : vector<8xf32>
      %52 = vector.multi_reduction <add>, %51, %cst_28 [1] : vector<8x8xf32> to vector<8xf32>
      %53 = vector.shape_cast %52 : vector<8xf32> to vector<8x1xf32>
      %c0_29 = arith.constant 0 : index
      %c0_30 = arith.constant 0 : index
      %54 = vector.load %arg9[%c0_29, %c0_30] : memref<8x1xf32, #tpu.memory_space<vmem>>, vector<8x1xf32>
      tpu.vector_store %arg9[%c0_29, %c0_30], %53 {strides = array<i32>} : memref<8x1xf32, #tpu.memory_space<vmem>>, vector<8x1xf32>,
    } else {
    }
    %c0_i32_25 = arith.constant 0 : i32
    %44 = arith.cmpi eq, %arg1, %c0_i32_25 : i32
    %45 = arith.extui %44 : i1 to i32
    %c0_i32_26 = arith.constant 0 : i32
    %46 = arith.cmpi ne, %45, %c0_i32_26 : i32
    scf.if %46 {
      %c0_27 = arith.constant 0 : index
      %c0_28 = arith.constant 0 : index
      %47 = vector.load %arg7[%c0_27, %c0_28] : memref<8x1xf32, #tpu.memory_space<vmem>>, vector<8x1xf32>
      %c0_29 = arith.constant 0 : index
      %c0_30 = arith.constant 0 : index
      %48 = vector.load %arg8[%c0_29, %c0_30] : memref<8x1xf32, #tpu.memory_space<vmem>>, vector<8x1xf32>
      %49 = math.log %48 : vector<8x1xf32>
      %50 = arith.addf %47, %49 : vector<8x1xf32>
      %c0_31 = arith.constant 0 : index
      %c0_32 = arith.constant 0 : index
      %51 = vector.load %arg9[%c0_31, %c0_32] : memref<8x1xf32, #tpu.memory_space<vmem>>, vector<8x1xf32>
      %cst_33 = arith.constant 2.000000e+00 : f32
      %52 = vector.broadcast %cst_33 : f32 to vector<8x1xf32>
      %53 = arith.mulf %52, %51 : vector<8x1xf32>
      %54 = arith.subf %50, %53 : vector<8x1xf32>
      %c0_34 = arith.constant 0 : index
      %c0_35 = arith.constant 0 : index
      %55 = vector.load %arg4[%c0_34, %c0_35] : memref<8x1xf32, #tpu.memory_space<vmem>>, vector<8x1xf32>
      tpu.vector_store %arg4[%c0_34, %c0_35], %54 {strides = array<i32>} : memref<8x1xf32, #tpu.memory_space<vmem>>, vector<8x1xf32>,
    } else {
    }
    return
  }
  func.func @transform_0(%arg0: i32, %arg1: i32) -> (i32, i32) {
    %c0_i32 = arith.constant 0 : i32
    %c0_i32_0 = arith.constant 0 : i32
    return %arg0, %c0_i32 : i32, i32
  }
  func.func @transform_1(%arg0: i32, %arg1: i32) -> (i32, i32) {
    %c0_i32 = arith.constant 0 : i32
    %c0_i32_0 = arith.constant 0 : i32
    return %arg1, %c0_i32 : i32, i32
  }
  func.func @transform_2(%arg0: i32, %arg1: i32) -> (i32, i32) {
    %c0_i32 = arith.constant 0 : i32
    %c0_i32_0 = arith.constant 0 : i32
    return %arg0, %c0_i32 : i32, i32
  }
  func.func @transform_3(%arg0: i32, %arg1: i32) -> (i32, i32, i32) {
    %c0_i32 = arith.constant 0 : i32
    %c0_i32_0 = arith.constant 0 : i32
    return %arg0, %c0_i32, %arg1 : i32, i32, i32
  }
  func.func @transform_4(%arg0: i32, %arg1: i32) -> (i32, i32, i32) {
    %c0_i32 = arith.constant 0 : i32
    %c0_i32_0 = arith.constant 0 : i32
    return %arg0, %c0_i32, %arg1 : i32, i32, i32
  }
}

</mosaic_0001>

<bundles_post_ra>
// kernel: tpu_custom_call.1
= control target key start
LH: loop header
LB: loop body
LE: loop exit
PB: predicated region body
PF: predicated region fallthrough
CT: control target
= control target key end

     0   :  { %10 = vsyncpa [#allocation7], 0  ;;  %s476_s0 = inlined_call_operand.hbm [shape: f32[8,32], index: 0, kind: input, shape index: {}]   ;;  %s477_s1 = inlined_call_operand.hbm [shape: f32[8,32], index: 1, kind: input, shape index: {}]   ;;  %s478_s2 = inlined_call_operand.vmem [shape: f32[8,1], index: 2, kind: output, shape index: {0}]   ;;  %s479_s3 = inlined_call_operand.hbm [shape: f32[1,1,8], index: 3, kind: output, shape index: {1}]   ;;  %s480_s4 = inlined_call_operand.hbm [shape: f32[1,1,8], index: 4, kind: output, shape index: {2}]  }
   0x1   :  { %11 = vsyncpa [#allocation10], 0 }
   0x2   :  { %12 = vsyncpa [#allocation8], 0 }
   0x3   :  { %13 = vsyncpa [#allocation13], 0  ;;  %s375_s15 = smov [#allocation6]   ;;  %s376_s17 = smov [#allocation9]  }
   0x4   :  { %s20_s16 = sshll.u32 %s375_s15, 4  ;;  %s30_s18 = sshll.u32 %s376_s17, 4  ;;  %s21_s16 = int_to_ptr.vmem [resolvable:$true] %s20_s16  ;;  %s31_s18 = int_to_ptr.vmem [resolvable:$true] %s30_s18 }
   0x5   :  { %s279_s21 = scalar_lea.hbm %s476_s0, 128 }
   0x6   :  { %p280_p0 = scmp.ne.s32.totalorder %s476_s0, %s279_s21  ;;  %p283_p1 = scmp.lt.u32.totalorder %s279_s21, %s476_s0 }
   0x8   :  { %p285_p2 = pnand %p283_p1, %p280_p0 }
   0xa   :  { %288 = shalt.err (!%p285_p2)
}
   0xb   :  { %s289_s26 = scalar_lea.vmem %s21_s16, 128  ;;  %p294_p4 = scmp.lt.s32.totalorder %s21_s16, %s21_s16 }
   0xc   :  { %p290_p3 = scmp.ne.s32.totalorder %s21_s16, %s289_s26  ;;  %p295_p5 = scmp.lt.s32.totalorder %s289_s26, %s289_s26 }
   0xe   :  { %p296_p6 = por %p295_p5, %p294_p4 }
  0x10   :  { %p297_p7 = pnand %p296_p6, %p290_p3 }
  0x12   :  { %300 = shalt.err (!%p297_p7)
}
  0x13   :  { %23 = dma.hbm_to_vmem [thread:$0]  %s476_s0, 128, %s21_s16, [#allocation7]  }
  0x14   :  { %s301_s5 = scalar_lea.hbm %s477_s1, 128 }
  0x15   :  { %p302_p8 = scmp.ne.s32.totalorder %s477_s1, %s301_s5  ;;  %p305_p9 = scmp.lt.u32.totalorder %s301_s5, %s477_s1 }
  0x17   :  { %p307_p10 = pnand %p305_p9, %p302_p8 }
  0x19   :  { %310 = shalt.err (!%p307_p10)
}
  0x1a   :  { %s311_s10 = scalar_lea.vmem %s31_s18, 128  ;;  %p316_p12 = scmp.lt.s32.totalorder %s31_s18, %s31_s18 }
  0x1b   :  { %p312_p11 = scmp.ne.s32.totalorder %s31_s18, %s311_s10  ;;  %p317_p13 = scmp.lt.s32.totalorder %s311_s10, %s311_s10 }
  0x1d   :  { %p318_p0 = por %p317_p13, %p316_p12 }
  0x1f   :  { %p319_p1 = pnand %p318_p0, %p312_p11 }
  0x21   :  { %322 = shalt.err (!%p319_p1)
}
  0x22   :  { %33 = dma.hbm_to_vmem [thread:$0]  %s477_s1, 128, %s31_s18, [#allocation10]  }
  0x23   :  { %367 = dma.done.wait [#allocation7], 128  }
  0x24   :  { %368 = vsyncadd [#allocation7], 4294967168 }
  0x25   :  { %369 = dma.done.wait [#allocation10], 128  }
  0x26   :  { %370 = vsyncadd [#allocation10], 4294967168  ;;  %v44_v0 = vld [vmem:[#allocation6] sm:$0xff]  ;;  %vm46_vm0 = vcmask 261120   ;;  %v57_v1 = vld [vmem:[#allocation9] sm:$0xff]  ;;  %vm54_vm1 = vcmask 7168   ;;  %v192_v44 = vlaneseq }
  0x27   :  { %v45_v2 = vmul.f32 %v44_v0, %v44_v0  ;;  %v58_v3 = vmul.f32 %v57_v1, %v57_v1  ;;  %v377_v6 = vmov 0.0   ;;  %vm378_vm2 = vmmov 0   ;;  %s381_s1 = smov [#allocation11]   ;;  %s382_s13 = smov [#allocation12]  }
  0x28   :  { %56 = vst.msk [vmem:[#allocation3] sm:$0xff] %vm54_vm1, %v377_v6  ;;  %252 = vmatprep.subr.mxu0 %v377_v6  ;;  %254 = vmatprep.mubr.msk.f32.mxu0 %vm378_vm2, %v377_v6  ;;  %v379_v16 = vmov -inf   ;;  %vm144_vm3 = vcmask 64512   ;;  %vm185_vm4 = vcmask 57344   ;;  %v380_v28 = vmov 0   ;;  %s222_s12 = sshll.u32 %s381_s1, 4  ;;  %s223_s12 = int_to_ptr.vmem [resolvable:$true] %s222_s12 }
  0x29   :  { %v47_v4 = vsel %vm46_vm0, %v45_v2, 0.0  ;;  %v60_v5 = vsel %vm46_vm0, %v58_v3, 0.0  ;;  %55 = vst.msk [vmem:[#allocation2] sm:$0xff] %vm54_vm1, %v379_v16  ;;  %265 = vset.pattern.permute.xlu1 %v380_v28  ;;  %266 = vset.pattern.permute.xlu0 %v380_v28  ;;  %v193_v45 = vshrl.u32 %v192_v44, 7  ;;  %v195_v46 = vand.u32 127, %v192_v44  ;;  %s232_s14 = sshll.u32 %s382_s13, 4  ;;  %p328_p3 = scmp.lt.s32.totalorder %s223_s12, %s223_s12  ;;  %s233_s14 = int_to_ptr.vmem [resolvable:$true] %s232_s14 }
  0x2a   :  { %48 = vadd.xlane.f32.xlu0 %v47_v4  ;;  %s323_s15 = scalar_lea.vmem %s223_s12, 16  ;;  %s327_s16 = scalar_lea.vmem %s223_s12, 32 }
  0x2b   :  { %vm196_vm5 = vcmp.eq.s32.totalorder %v193_v45, %v195_v46  ;;  %p324_p2 = scmp.ne.s32.totalorder %s223_s12, %s323_s15  ;;  %p329_p4 = scmp.lt.s32.totalorder %s327_s16, %s323_s15 }
  0x2d   :  { %p330_p5 = por %p329_p4, %p328_p3 }
  0x2e   :  { %61 = vadd.xlane.f32.xlu0 %v60_v5 }
  0x2f   :  { %p331_p6 = pnand %p330_p5, %p324_p2 }
  0x30   :  { %v143_v37 = vld [vmem:[#allocation2] sm:$0xff] }
  0xb7   :  { %v49_v7 = vpop.xlane.xlu0 %48 }
  0xb8   :  { %v50_v8 = vmax.f32 %v49_v7, 1e-16 }
  0xba   :  { %267 = vrsqrt.f32 %v50_v8 }
  0xbb   :  { %v62_v9 = vpop.xlane.xlu0 %61 }
  0xbc   :  { %v63_v10 = vmax.f32 %v62_v9, 1e-16 }
  0xbe   :  { %269 = vrsqrt.f32 %v63_v10 }
  0xc4   :  { %v268_v11 = vpop.eup %267 }
  0xc5   :  { %v52_v12 = vmul.f32 %v268_v11, %v44_v0 }
  0xc7   :  { %53 = vst.msk [vmem:[#allocation5] sm:$0xff] %vm46_vm0, %v52_v12 }
  0xc8   :  { %v270_v13 = vpop.eup %269 }
  0xc9   :  { %v65_v14 = vmul.f32 %v270_v13, %v57_v1 }
  0xcb   :  { %253 = vmatpush3.xpose.msk.msra.mxu0 %vm46_vm0, %v65_v14 }
  0xce   :  { %v66_v15 = vld [vmem:[#allocation5] sm:$0xff] }
  0xcf   :  { %255 = vmatmul.mubr.msk.f32.vlgmr.msra.gmra.mrb[0].mxu0 %vm46_vm0, %v66_v15 }
 0x1a2   :  { %v139_v17 = vpop.f32.mrb[0].mxu0 }
 0x1a3   :  { %v256_v18 = vpop.f32.mrb[1].mxu0  ;;  %v145_v19 = vsel %vm144_vm3, %v139_v17, -inf  ;;  %v197_v49 = vsel %vm196_vm5, %v139_v17, 0.0 }
 0x1a4   :  { %146 = vmax.xlane.f32.xlu1 %v145_v19  ;;  %v169_v20 = vrot.slane %v145_v19, 4  ;;  %v198_v50 = vsel %vm144_vm3, %v197_v49, 0.0 }
 0x1a6   :  { %v170_v21 = vmax.f32 %v145_v19, %v169_v20 }
 0x1a8   :  { %v171_v22 = vrot.slane %v170_v21, 2 }
 0x1aa   :  { %v172_v23 = vmax.f32 %v170_v21, %v171_v22 }
 0x1ac   :  { %v173_v24 = vrot.slane %v172_v23, 1 }
 0x1ae   :  { %v174_v25 = vmax.f32 %v172_v23, %v173_v24 }
 0x1b0   :  { %v175_v26 = vsub.f32 %v139_v17, %v174_v25  ;;  %186 = vst.msk [vmem:[#allocation11] sm:$0x1] %vm185_vm4, %v174_v25 }
 0x1b2   :  { %v176_v27 = vmul.f32 1.442695, %v175_v26 }
 0x1b4   :  { %271 = vpow2.f32 %v176_v27 }
 0x1be   :  { %v272_v29 = vpop.eup %271 }
 0x1bf   :  { %v178_v30 = vsel %vm144_vm3, %v272_v29, 0.0 }
 0x1c0   :  { %v179_v31 = vrot.slane %v178_v30, 4 }
 0x1c2   :  { %v180_v32 = vadd.f32 %v179_v31, %v178_v30 }
 0x1c4   :  { %v181_v33 = vrot.slane %v180_v32, 2 }
 0x1c6   :  { %v182_v34 = vadd.f32 %v181_v33, %v180_v32 }
 0x1c8   :  { %v183_v35 = vrot.slane %v182_v34, 1 }
 0x1ca   :  { %v184_v36 = vadd.f32 %v183_v35, %v182_v34 }
 0x1cc   :  { %187 = vst.msk [vmem:[#allocation12] sm:$0x1] %vm185_vm4, %v184_v36 }
 0x231   :  { %v147_v38 = vpop.xlane.xlu1 %146 }
 0x232   :  { %v148_v39 = vmax.f32 %v143_v37, %v147_v38 }
 0x234   :  { %v150_v40 = vsub.f32 %v143_v37, %v148_v39  ;;  %168 = vst.msk [vmem:[#allocation2] sm:$0xff] %vm54_vm1, %v148_v39  ;;  %156 = vperm.xlu1 %265, %v148_v39  }
 0x2b3   :  { %v157_v41 = vpop.permute.xlu1 %156 }
 0x2b4   :  { %v159_v42 = vsub.f32 %v139_v17, %v157_v41 }
 0x2b6   :  { %v160_v43 = vmul.f32 1.442695, %v159_v42 }
 0x2b8   :  { %273 = vpow2.f32 %v160_v43 }
 0x2c2   :  { %v274_v47 = vpop.eup %273 }
 0x2c3   :  { %v162_v48 = vsel %vm144_vm3, %v274_v47, 0.0 }
 0x2c4   :  { %163 = vadd.xlane.f32.xlu0 %v162_v48 }
 0x2c8   :  { %199 = vadd.xlane.f32.xlu0 %v198_v50 }
 0x2c9   :  { %334 = shalt.err (!%p331_p6)
}
 0x2ca   :  { %s335_s19 = scalar_lea.hbm %s479_s3, 16 }
 0x2cb   :  { %p336_p7 = scmp.ne.s32.totalorder %s479_s3, %s335_s19  ;;  %p339_p8 = scmp.lt.u32.totalorder %s335_s19, %s479_s3 }
 0x2cd   :  { %p341_p9 = pnand %p339_p8, %p336_p7 }
 0x2cf   :  { %344 = shalt.err (!%p341_p9)
}
 0x2d0   :  { %225 = dma.vmem_to_hbm [thread:$0]  %s223_s12, 16, %s479_s3, [#allocation8]  }
 0x2d1   :  { %s345_s26 = scalar_lea.vmem %s233_s14, 16  ;;  %s349_s27 = scalar_lea.vmem %s233_s14, 32 }
 0x2d2   :  { %p346_p10 = scmp.ne.s32.totalorder %s233_s14, %s345_s26  ;;  %p350_p11 = scmp.lt.s32.totalorder %s233_s14, %s233_s14 }
 0x2d3   :  { %p351_p12 = scmp.lt.s32.totalorder %s349_s27, %s345_s26 }
 0x2d5   :  { %p352_p13 = por %p351_p12, %p350_p11 }
 0x2d7   :  { %p353_p0 = pnand %p352_p13, %p346_p10 }
 0x2d9   :  { %356 = shalt.err (!%p353_p0)
}
 0x2da   :  { %s357_s30 = scalar_lea.hbm %s480_s4, 16 }
 0x2db   :  { %p358_p1 = scmp.ne.s32.totalorder %s480_s4, %s357_s30  ;;  %p361_p2 = scmp.lt.u32.totalorder %s357_s30, %s480_s4 }
 0x2dd   :  { %p363_p3 = pnand %p361_p2, %p358_p1 }
 0x2df   :  { %366 = shalt.err (!%p363_p3)
}
 0x2e0   :  { %235 = dma.vmem_to_hbm [thread:$0]  %s233_s14, 16, %s480_s4, [#allocation13]   ;;  %v151_v51 = vmul.f32 1.442695, %v150_v40  ;;  %v149_v53 = vld [vmem:[#allocation3] sm:$0xff]  ;;  %v205_v62 = vld [vmem:[#allocation2] sm:$0xff] }
 0x2e2   :  { %275 = vpow2.f32 %v151_v51 }
 0x2ec   :  { %v276_v52 = vpop.eup %275 }
 0x2ed   :  { %v153_v54 = vmul.f32 %v276_v52, %v149_v53 }
 0x351   :  { %v164_v55 = vpop.xlane.xlu0 %163 }
 0x352   :  { %v165_v56 = vadd.f32 %v164_v55, %v153_v54 }
 0x354   :  { %167 = vst.msk [vmem:[#allocation3] sm:$0xff] %vm54_vm1, %v165_v56 }
 0x355   :  { %v200_v57 = vpop.xlane.xlu0 %199 }
 0x356   :  { %201 = vst.msk [vmem:[#allocation4] sm:$0xff] %vm54_vm1, %v200_v57 }
 0x35b   :  { %v206_v58 = vld [vmem:[#allocation3] sm:$0xff] }
 0x35c   :  { %277 = vlog2.f32 %v206_v58 }
 0x35d   :  { %v210_v60 = vld [vmem:[#allocation4] sm:$0xff] }
 0x35e   :  { %v211_v0 = vmul.f32 2.0, %v210_v60 }
 0x366   :  { %v278_v59 = vpop.eup %277 }
 0x367   :  { %v208_v61 = vmul.f32 0.6931472, %v278_v59 }
 0x369   :  { %v209_v63 = vadd.f32 %v208_v61, %v205_v62 }
 0x36b   :  { %v212_v1 = vsub.f32 %v209_v63, %v211_v0 }
 0x36d   :  { %213 = vst.msk [vmem:[%s478_s2] sm:$0xff] %vm54_vm1, %v212_v1 }
 0x36e   :  { %371 = dma.done.wait [#allocation8], 16  }
 0x36f   :  { %372 = vsyncadd [#allocation8], 4294967280 }
 0x370   :  { %373 = dma.done.wait [#allocation13], 16  }
 0x371   :  { %374 = vsyncadd [#allocation13], 4294967280 }
 0x372   :  { %244 = vsyncpa [#allocation7], 1 }
 0x373   :  { %245 = vsyncpa [#allocation10], 1 }
 0x374   :  { %246 = vsyncpa [#allocation8], 1 }
 0x375   :  { %247 = vsyncpa [#allocation13], 1 }

</bundles_post_ra>
